<compile_context>
chip_gen: v6e
topology: v6e:2x2x1
jax: 0.10.0
libtpu: 0.0.40
codegen_flags: <defaults>
</compile_context>

<pallas_src>
import functools

import jax
import jax.numpy as jnp
from jax.experimental import pallas as pl
from jax.experimental.pallas import tpu as pltpu


_TILE_ROWS = 1024   # large row tile for the mem-bound streaming paths
_LN_EPS = 1e-5      # nn.LayerNorm default


def _round_up(n, m):
    return ((n + m - 1) // m) * m


# ----------------------------------------------------------------------------
# Shared in-kernel math: Linear -> ReLU -> Linear -> LayerNorm (f32 internals)
# ----------------------------------------------------------------------------
def _mlp_ln(x, w1, b1, w2, b2, gamma, beta, eps):
    h = jnp.dot(x, w1, preferred_element_type=jnp.float32)
    h = jnp.maximum(h + b1.astype(jnp.float32), 0.0)
    y = jnp.dot(h.astype(w2.dtype), w2, preferred_element_type=jnp.float32)
    y = y + b2.astype(jnp.float32)
    mean = jnp.mean(y, axis=-1, keepdims=True)
    cent = y - mean
    var = jnp.mean(cent * cent, axis=-1, keepdims=True)
    y_n = cent * jax.lax.rsqrt(var + eps)
    return y_n * gamma.astype(jnp.float32) + beta.astype(jnp.float32)


# ----------------------------------------------------------------------------
# Edge path: fused MLP + LayerNorm over a tile of edge rows
# ----------------------------------------------------------------------------
def _edge_mlp_kernel(x_ref, w1_ref, b1_ref, w2_ref, b2_ref, g_ref, beta_ref,
                     o_ref, *, eps):
    out = _mlp_ln(x_ref[...], w1_ref[...], b1_ref[...], w2_ref[...],
                  b2_ref[...], g_ref[...], beta_ref[...], eps)
    o_ref[...] = out.astype(o_ref.dtype)


def mlp_encode(x, p, *, eps=_LN_EPS):
    """x: [rows, in_dim] -> [rows, out_dim] via fused Linear-ReLU-Linear-LN."""
    rows, in_dim = x.shape
    out_dim = p["w2"].shape[1]

    tile = min(_TILE_ROWS, _round_up(rows, 8))
    rows_pad = _round_up(rows, tile)
    if rows_pad != rows:
        x = jnp.pad(x, ((0, rows_pad - rows), (0, 0)))

    out = pl.pallas_call(
        functools.partial(_edge_mlp_kernel, eps=eps),
        out_shape=jax.ShapeDtypeStruct((rows_pad, out_dim), x.dtype),
        grid=(rows_pad // tile,),
        in_specs=[
            pl.BlockSpec((tile, in_dim), lambda i: (i, 0)),        # streamed rows
            pl.BlockSpec(p["w1"].shape, lambda i: (0, 0)),         # resident params
            pl.BlockSpec(p["b1"].shape, lambda i: (0, 0)),
            pl.BlockSpec(p["w2"].shape, lambda i: (0, 0)),
            pl.BlockSpec(p["b2"].shape, lambda i: (0, 0)),
            pl.BlockSpec(p["gamma"].shape, lambda i: (0, 0)),
            pl.BlockSpec(p["beta"].shape, lambda i: (0, 0)),
        ],
        out_specs=pl.BlockSpec((tile, out_dim), lambda i: (i, 0)),
        compiler_params=pltpu.CompilerParams(
            dimension_semantics=("parallel",)),
    )(x, p["w1"], p["b1"], p["w2"], p["b2"], p["gamma"], p["beta"])

    return out[:rows]


# ----------------------------------------------------------------------------
# Node path: encode globals (tiny, VMEM-resident) and gather per node, fused.
# The gather is a one-hot matmul on the MXU -> no dynamic gather lowering,
# no separate XLA gather / extra HBM round-trip of the graph latents.
# ----------------------------------------------------------------------------
def _node_mlp_gather_kernel(batch_ref, glob_ref, w1_ref, b1_ref, w2_ref,
                            b2_ref, g_ref, beta_ref, o_ref, *, eps,
                            num_graphs):
    # Encode all graph globals (tiny: [num_graphs, glob_dim]); recomputed per
    # tile so the kernel is correct under megacore "parallel" sharding.
    glob_enc = _mlp_ln(glob_ref[...], w1_ref[...], b1_ref[...], w2_ref[...],
                       b2_ref[...], g_ref[...], beta_ref[...], eps)  # f32

    b = batch_ref[...]                                   # [tile, 1] int32
    tile = b.shape[0]
    g_ids = jax.lax.broadcasted_iota(jnp.int32, (tile, num_graphs), 1)
    onehot = (b == g_ids).astype(jnp.float32)            # exact row selector
    out = jnp.dot(onehot, glob_enc, preferred_element_type=jnp.float32)
    o_ref[...] = out.astype(o_ref.dtype)


def node_encode_gather(global_attr, batch, p, *, eps=_LN_EPS):
    """Returns node_encoder(global_attr)[batch]: [num_nodes, out_dim]."""
    num_graphs, _ = global_attr.shape
    out_dim = p["w2"].shape[1]
    num_nodes = batch.shape[0]

    tile = min(_TILE_ROWS, _round_up(num_nodes, 8))
    nodes_pad = _round_up(num_nodes, tile)
    batch2d = batch.astype(jnp.int32).reshape(num_nodes, 1)
    if nodes_pad != num_nodes:
        batch2d = jnp.pad(batch2d, ((0, nodes_pad - num_nodes), (0, 0)))

    out = pl.pallas_call(
        functools.partial(_node_mlp_gather_kernel, eps=eps,
                          num_graphs=num_graphs),
        out_shape=jax.ShapeDtypeStruct((nodes_pad, out_dim),
                                       global_attr.dtype),
        grid=(nodes_pad // tile,),
        in_specs=[
            pl.BlockSpec((tile, 1), lambda i: (i, 0)),             # node->graph ids
            pl.BlockSpec(global_attr.shape, lambda i: (0, 0)),     # resident globals
            pl.BlockSpec(p["w1"].shape, lambda i: (0, 0)),         # resident params
            pl.BlockSpec(p["b1"].shape, lambda i: (0, 0)),
            pl.BlockSpec(p["w2"].shape, lambda i: (0, 0)),
            pl.BlockSpec(p["b2"].shape, lambda i: (0, 0)),
            pl.BlockSpec(p["gamma"].shape, lambda i: (0, 0)),
            pl.BlockSpec(p["beta"].shape, lambda i: (0, 0)),
        ],
        out_specs=pl.BlockSpec((tile, out_dim), lambda i: (i, 0)),
        compiler_params=pltpu.CompilerParams(
            dimension_semantics=("parallel",)),
    )(batch2d, global_attr, p["w1"], p["b1"], p["w2"], p["b2"],
      p["gamma"], p["beta"])

    return out[:num_nodes]


# ----------------------------------------------------------------------------
# Encoder wrapper (parameter container + forward)
# ----------------------------------------------------------------------------
def init_mlp_params(key, in_dim, hidden_dim, out_dim, dtype=jnp.float32):
    """Kaiming-uniform-ish init; biases zero, LN affine = (1, 0)."""
    k1, k2 = jax.random.split(key)
    s1 = 1.0 / jnp.sqrt(in_dim)
    s2 = 1.0 / jnp.sqrt(hidden_dim)
    w1 = jax.random.uniform(k1, (in_dim, hidden_dim), dtype, -s1, s1)
    w2 = jax.random.uniform(k2, (hidden_dim, out_dim), dtype, -s2, s2)
    b1 = jnp.zeros((1, hidden_dim), dtype)
    b2 = jnp.zeros((1, out_dim), dtype)
    gamma = jnp.ones((1, out_dim), dtype)
    beta = jnp.zeros((1, out_dim), dtype)
    return dict(w1=w1, b1=b1, w2=w2, b2=b2, gamma=gamma, beta=beta)


def encoder_forward(params, edge_attr, global_attr, batch):
    """Pallas-backed Encoder.forward.

    edge_attr:   [num_edges, edge_feature_dim]
    global_attr: [num_graphs, glob_feature_dim]
    batch:       [num_nodes] int32, node -> graph index
    returns (x_enc [num_nodes, node_latent_dim],
             edge_attr_enc [num_edges, edge_latent_dim])
    """
    x_enc = node_encode_gather(global_attr, batch, params["node"])
    edge_attr_enc = mlp_encode(edge_attr, params["edge"])
    return x_enc, edge_attr_enc


# ----------------------------------------------------------------------------
# Reference (pure JAX) for a sanity check
# ----------------------------------------------------------------------------
def _mlp_ref(x, p, eps=_LN_EPS):
    h = jnp.maximum(x @ p["w1"] + p["b1"], 0.0)
    y = h @ p["w2"] + p["b2"]
    mean = jnp.mean(y, axis=-1, keepdims=True)
    var = jnp.mean((y - mean) ** 2, axis=-1, keepdims=True)
    return (y - mean) / jnp.sqrt(var + eps) * p["gamma"] + p["beta"]


if __name__ == "__main__":
    # Module hyperparameters (small, consistent with the forward pass)
    glob_feature_dim = 4
    node_enc_mlp_layers = [32]          # hidden dim of node MLP
    node_latent_dim = 32
    edge_feature_dim = 4
    edge_enc_mlp_layers = [32]          # hidden dim of edge MLP
    edge_latent_dim = 32

    num_graphs = 2
    num_nodes = 8
    num_edges = 16

    key = jax.random.PRNGKey(0)
    k_edge, k_glob, k_pn, k_pe = jax.random.split(key, 4)

    edge_attr = jax.random.normal(k_edge, (num_edges, edge_feature_dim),
                                  jnp.float32)
    global_attr = jax.random.normal(k_glob, (num_graphs, glob_feature_dim),
                                    jnp.float32)
    # node -> graph assignment (sorted, as in torch_geometric batching)
    batch = jnp.array([0, 0, 0, 0, 1, 1, 1, 1], dtype=jnp.int32)

    params = {
        "node": init_mlp_params(k_pn, glob_feature_dim,
                                node_enc_mlp_layers[0], node_latent_dim),
        "edge": init_mlp_params(k_pe, edge_feature_dim,
                                edge_enc_mlp_layers[0], edge_latent_dim),
    }

    x_enc, edge_enc = jax.jit(encoder_forward)(params, edge_attr, global_attr,
                                               batch)
    jax.block_until_ready((x_enc, edge_enc))

    # correctness check vs. pure-JAX reference
    x_ref = jnp.take(_mlp_ref(global_attr, params["node"]), batch, axis=0)
    e_ref = _mlp_ref(edge_attr, params["edge"])
    assert x_enc.shape == (num_nodes, node_latent_dim)
    assert edge_enc.shape == (num_edges, edge_latent_dim)
    assert jnp.allclose(x_enc, x_ref, atol=1e-4, rtol=1e-4)
    assert jnp.allclose(edge_enc, e_ref, atol=1e-4, rtol=1e-4)

    print("KERNEL_OK")
</pallas_src>

<mosaic_0001>
module attributes {stable_mosaic.version = 11 : i64} {
  func.func @_edge_mlp_kernel(%arg0: i32, %arg1: memref<16x4xf32, #tpu.memory_space<vmem>>, %arg2: memref<4x32xf32, #tpu.memory_space<vmem>>, %arg3: memref<1x32xf32, #tpu.memory_space<vmem>>, %arg4: memref<32x32xf32, #tpu.memory_space<vmem>>, %arg5: memref<1x32xf32, #tpu.memory_space<vmem>>, %arg6: memref<1x32xf32, #tpu.memory_space<vmem>>, %arg7: memref<1x32xf32, #tpu.memory_space<vmem>>, %arg8: memref<16x32xf32, #tpu.memory_space<vmem>>) attributes {dimension_semantics = [#tpu.dimension_semantics<parallel>], iteration_bounds = array<i64: 1>, scalar_prefetch = 0 : i64, scratch_operands = 0 : i64, tpu.core_type = #tpu.core_type<tc>, window_params = [{transform_indices = @transform_0, window_bounds = array<i64: 16, 4>}, {pipeline_mode = #tpu.pipeline_mode<synchronous>, transform_indices = @transform_1, window_bounds = array<i64: 4, 32>}, {pipeline_mode = #tpu.pipeline_mode<synchronous>, transform_indices = @transform_2, window_bounds = array<i64: 1, 32>}, {pipeline_mode = #tpu.pipeline_mode<synchronous>, transform_indices = @transform_3, window_bounds = array<i64: 32, 32>}, {pipeline_mode = #tpu.pipeline_mode<synchronous>, transform_indices = @transform_4, window_bounds = array<i64: 1, 32>}, {pipeline_mode = #tpu.pipeline_mode<synchronous>, transform_indices = @transform_5, window_bounds = array<i64: 1, 32>}, {pipeline_mode = #tpu.pipeline_mode<synchronous>, transform_indices = @transform_6, window_bounds = array<i64: 1, 32>}, {transform_indices = @transform_7, window_bounds = array<i64: 16, 32>}]} {
    %c0 = arith.constant 0 : index
    %c0_0 = arith.constant 0 : index
    %0 = vector.load %arg1[%c0, %c0_0] : memref<16x4xf32, #tpu.memory_space<vmem>>, vector<16x4xf32>
    %c0_1 = arith.constant 0 : index
    %c0_2 = arith.constant 0 : index
    %1 = vector.load %arg2[%c0_1, %c0_2] : memref<4x32xf32, #tpu.memory_space<vmem>>, vector<4x32xf32>
    %c0_3 = arith.constant 0 : index
    %c0_4 = arith.constant 0 : index
    %2 = vector.load %arg3[%c0_3, %c0_4] : memref<1x32xf32, #tpu.memory_space<vmem>>, vector<1x32xf32>
    %c0_5 = arith.constant 0 : index
    %c0_6 = arith.constant 0 : index
    %3 = vector.load %arg4[%c0_5, %c0_6] : memref<32x32xf32, #tpu.memory_space<vmem>>, vector<32x32xf32>
    %c0_7 = arith.constant 0 : index
    %c0_8 = arith.constant 0 : index
    %4 = vector.load %arg5[%c0_7, %c0_8] : memref<1x32xf32, #tpu.memory_space<vmem>>, vector<1x32xf32>
    %c0_9 = arith.constant 0 : index
    %c0_10 = arith.constant 0 : index
    %5 = vector.load %arg6[%c0_9, %c0_10] : memref<1x32xf32, #tpu.memory_space<vmem>>, vector<1x32xf32>
    %c0_11 = arith.constant 0 : index
    %c0_12 = arith.constant 0 : index
    %6 = vector.load %arg7[%c0_11, %c0_12] : memref<1x32xf32, #tpu.memory_space<vmem>>, vector<1x32xf32>
    %cst = arith.constant dense<0.000000e+00> : vector<16x32xf32>
    %7 = tpu.matmul %0, %1, %cst {dimension_numbers = #tpu.dot_dimension_numbers<[1], [0], [0], [1], [0, 0, 1, 1], [], []>} : vector<16x4xf32>, vector<4x32xf32>, vector<16x32xf32> -> vector<16x32xf32>
    %8 = vector.broadcast %2 : vector<1x32xf32> to vector<16x32xf32>
    %9 = arith.addf %7, %8 : vector<16x32xf32>
    %cst_13 = arith.constant 0.000000e+00 : f32
    %10 = vector.broadcast %cst_13 : f32 to vector<16x32xf32>
    %11 = arith.maximumf %9, %10 : vector<16x32xf32>
    %cst_14 = arith.constant dense<0.000000e+00> : vector<16x32xf32>
    %12 = tpu.matmul %11, %3, %cst_14 {dimension_numbers = #tpu.dot_dimension_numbers<[1], [0], [0], [1], [0, 0, 1, 1], [], []>} : vector<16x32xf32>, vector<32x32xf32>, vector<16x32xf32> -> vector<16x32xf32>
    %13 = vector.broadcast %4 : vector<1x32xf32> to vector<16x32xf32>
    %14 = arith.addf %12, %13 : vector<16x32xf32>
    %cst_15 = arith.constant dense<0.000000e+00> : vector<16xf32>
    %15 = vector.multi_reduction <add>, %14, %cst_15 [1] : vector<16x32xf32> to vector<16xf32>
    %16 = vector.shape_cast %15 : vector<16xf32> to vector<16x1xf32>
    %cst_16 = arith.constant 3.200000e+01 : f32
    %17 = vector.broadcast %cst_16 : f32 to vector<16x1xf32>
    %18 = arith.divf %16, %17 : vector<16x1xf32>
    %19 = vector.broadcast %18 : vector<16x1xf32> to vector<16x32xf32>
    %20 = arith.subf %14, %19 : vector<16x32xf32>
    %21 = arith.mulf %20, %20 : vector<16x32xf32>
    %cst_17 = arith.constant dense<0.000000e+00> : vector<16xf32>
    %22 = vector.multi_reduction <add>, %21, %cst_17 [1] : vector<16x32xf32> to vector<16xf32>
    %23 = vector.shape_cast %22 : vector<16xf32> to vector<16x1xf32>
    %cst_18 = arith.constant 3.200000e+01 : f32
    %24 = vector.broadcast %cst_18 : f32 to vector<16x1xf32>
    %25 = arith.divf %23, %24 : vector<16x1xf32>
    %cst_19 = arith.constant 9.99999974E-6 : f32
    %26 = vector.broadcast %cst_19 : f32 to vector<16x1xf32>
    %27 = arith.addf %25, %26 : vector<16x1xf32>
    %28 = math.rsqrt %27 : vector<16x1xf32>
    %29 = vector.broadcast %28 : vector<16x1xf32> to vector<16x32xf32>
    %30 = arith.mulf %20, %29 : vector<16x32xf32>
    %31 = vector.broadcast %5 : vector<1x32xf32> to vector<16x32xf32>
    %32 = arith.mulf %30, %31 : vector<16x32xf32>
    %33 = vector.broadcast %6 : vector<1x32xf32> to vector<16x32xf32>
    %34 = arith.addf %32, %33 : vector<16x32xf32>
    %c0_20 = arith.constant 0 : index
    %c0_21 = arith.constant 0 : index
    %35 = vector.load %arg8[%c0_20, %c0_21] : memref<16x32xf32, #tpu.memory_space<vmem>>, vector<16x32xf32>
    tpu.vector_store %arg8[%c0_20, %c0_21], %34 {strides = array<i32>} : memref<16x32xf32, #tpu.memory_space<vmem>>, vector<16x32xf32>,
    return
  }
  func.func @transform_0(%arg0: i32) -> (i32, i32) {
    %c0_i32 = arith.constant 0 : i32
    %c0_i32_0 = arith.constant 0 : i32
    return %arg0, %c0_i32 : i32, i32
  }
  func.func @transform_1(%arg0: i32) -> (i32, i32) {
    %c0_i32 = arith.constant 0 : i32
    %c0_i32_0 = arith.constant 0 : i32
    %c0_i32_1 = arith.constant 0 : i32
    return %c0_i32, %c0_i32_0 : i32, i32
  }
  func.func @transform_2(%arg0: i32) -> (i32, i32) {
    %c0_i32 = arith.constant 0 : i32
    %c0_i32_0 = arith.constant 0 : i32
    %c0_i32_1 = arith.constant 0 : i32
    return %c0_i32, %c0_i32_0 : i32, i32
  }
  func.func @transform_3(%arg0: i32) -> (i32, i32) {
    %c0_i32 = arith.constant 0 : i32
    %c0_i32_0 = arith.constant 0 : i32
    %c0_i32_1 = arith.constant 0 : i32
    return %c0_i32, %c0_i32_0 : i32, i32
  }
  func.func @transform_4(%arg0: i32) -> (i32, i32) {
    %c0_i32 = arith.constant 0 : i32
    %c0_i32_0 = arith.constant 0 : i32
    %c0_i32_1 = arith.constant 0 : i32
    return %c0_i32, %c0_i32_0 : i32, i32
  }
  func.func @transform_5(%arg0: i32) -> (i32, i32) {
    %c0_i32 = arith.constant 0 : i32
    %c0_i32_0 = arith.constant 0 : i32
    %c0_i32_1 = arith.constant 0 : i32
    return %c0_i32, %c0_i32_0 : i32, i32
  }
  func.func @transform_6(%arg0: i32) -> (i32, i32) {
    %c0_i32 = arith.constant 0 : i32
    %c0_i32_0 = arith.constant 0 : i32
    %c0_i32_1 = arith.constant 0 : i32
    return %c0_i32, %c0_i32_0 : i32, i32
  }
  func.func @transform_7(%arg0: i32) -> (i32, i32) {
    %c0_i32 = arith.constant 0 : i32
    %c0_i32_0 = arith.constant 0 : i32
    return %arg0, %c0_i32 : i32, i32
  }
}

module attributes {stable_mosaic.version = 11 : i64} {
  func.func @_node_mlp_gather_kernel(%arg0: i32, %arg1: memref<8x1xi32, #tpu.memory_space<vmem>>, %arg2: memref<2x4xf32, #tpu.memory_space<vmem>>, %arg3: memref<4x32xf32, #tpu.memory_space<vmem>>, %arg4: memref<1x32xf32, #tpu.memory_space<vmem>>, %arg5: memref<32x32xf32, #tpu.memory_space<vmem>>, %arg6: memref<1x32xf32, #tpu.memory_space<vmem>>, %arg7: memref<1x32xf32, #tpu.memory_space<vmem>>, %arg8: memref<1x32xf32, #tpu.memory_space<vmem>>, %arg9: memref<8x32xf32, #tpu.memory_space<vmem>>) attributes {dimension_semantics = [#tpu.dimension_semantics<parallel>], iteration_bounds = array<i64: 1>, scalar_prefetch = 0 : i64, scratch_operands = 0 : i64, tpu.core_type = #tpu.core_type<tc>, window_params = [{transform_indices = @transform_0, window_bounds = array<i64: 8, 1>}, {pipeline_mode = #tpu.pipeline_mode<synchronous>, transform_indices = @transform_1, window_bounds = array<i64: 2, 4>}, {pipeline_mode = #tpu.pipeline_mode<synchronous>, transform_indices = @transform_2, window_bounds = array<i64: 4, 32>}, {pipeline_mode = #tpu.pipeline_mode<synchronous>, transform_indices = @transform_3, window_bounds = array<i64: 1, 32>}, {pipeline_mode = #tpu.pipeline_mode<synchronous>, transform_indices = @transform_4, window_bounds = array<i64: 32, 32>}, {pipeline_mode = #tpu.pipeline_mode<synchronous>, transform_indices = @transform_5, window_bounds = array<i64: 1, 32>}, {pipeline_mode = #tpu.pipeline_mode<synchronous>, transform_indices = @transform_6, window_bounds = array<i64: 1, 32>}, {pipeline_mode = #tpu.pipeline_mode<synchronous>, transform_indices = @transform_7, window_bounds = array<i64: 1, 32>}, {transform_indices = @transform_8, window_bounds = array<i64: 8, 32>}]} {
    %c0 = arith.constant 0 : index
    %c0_0 = arith.constant 0 : index
    %0 = vector.load %arg2[%c0, %c0_0] : memref<2x4xf32, #tpu.memory_space<vmem>>, vector<2x4xf32>
    %c0_1 = arith.constant 0 : index
    %c0_2 = arith.constant 0 : index
    %1 = vector.load %arg3[%c0_1, %c0_2] : memref<4x32xf32, #tpu.memory_space<vmem>>, vector<4x32xf32>
    %c0_3 = arith.constant 0 : index
    %c0_4 = arith.constant 0 : index
    %2 = vector.load %arg4[%c0_3, %c0_4] : memref<1x32xf32, #tpu.memory_space<vmem>>, vector<1x32xf32>
    %c0_5 = arith.constant 0 : index
    %c0_6 = arith.constant 0 : index
    %3 = vector.load %arg5[%c0_5, %c0_6] : memref<32x32xf32, #tpu.memory_space<vmem>>, vector<32x32xf32>
    %c0_7 = arith.constant 0 : index
    %c0_8 = arith.constant 0 : index
    %4 = vector.load %arg6[%c0_7, %c0_8] : memref<1x32xf32, #tpu.memory_space<vmem>>, vector<1x32xf32>
    %c0_9 = arith.constant 0 : index
    %c0_10 = arith.constant 0 : index
    %5 = vector.load %arg7[%c0_9, %c0_10] : memref<1x32xf32, #tpu.memory_space<vmem>>, vector<1x32xf32>
    %c0_11 = arith.constant 0 : index
    %c0_12 = arith.constant 0 : index
    %6 = vector.load %arg8[%c0_11, %c0_12] : memref<1x32xf32, #tpu.memory_space<vmem>>, vector<1x32xf32>
    %cst = arith.constant dense<0.000000e+00> : vector<2x32xf32>
    %7 = tpu.matmul %0, %1, %cst {dimension_numbers = #tpu.dot_dimension_numbers<[1], [0], [0], [1], [0, 0, 1, 1], [], []>} : vector<2x4xf32>, vector<4x32xf32>, vector<2x32xf32> -> vector<2x32xf32>
    %8 = vector.broadcast %2 : vector<1x32xf32> to vector<2x32xf32>
    %9 = arith.addf %7, %8 : vector<2x32xf32>
    %cst_13 = arith.constant 0.000000e+00 : f32
    %10 = vector.broadcast %cst_13 : f32 to vector<2x32xf32>
    %11 = arith.maximumf %9, %10 : vector<2x32xf32>
    %cst_14 = arith.constant dense<0.000000e+00> : vector<2x32xf32>
    %12 = tpu.matmul %11, %3, %cst_14 {dimension_numbers = #tpu.dot_dimension_numbers<[1], [0], [0], [1], [0, 0, 1, 1], [], []>} : vector<2x32xf32>, vector<32x32xf32>, vector<2x32xf32> -> vector<2x32xf32>
    %13 = vector.broadcast %4 : vector<1x32xf32> to vector<2x32xf32>
    %14 = arith.addf %12, %13 : vector<2x32xf32>
    %cst_15 = arith.constant dense<0.000000e+00> : vector<2xf32>
    %15 = vector.multi_reduction <add>, %14, %cst_15 [1] : vector<2x32xf32> to vector<2xf32>
    %16 = vector.shape_cast %15 : vector<2xf32> to vector<2x1xf32>
    %cst_16 = arith.constant 3.200000e+01 : f32
    %17 = vector.broadcast %cst_16 : f32 to vector<2x1xf32>
    %18 = arith.divf %16, %17 : vector<2x1xf32>
    %19 = vector.broadcast %18 : vector<2x1xf32> to vector<2x32xf32>
    %20 = arith.subf %14, %19 : vector<2x32xf32>
    %21 = arith.mulf %20, %20 : vector<2x32xf32>
    %cst_17 = arith.constant dense<0.000000e+00> : vector<2xf32>
    %22 = vector.multi_reduction <add>, %21, %cst_17 [1] : vector<2x32xf32> to vector<2xf32>
    %23 = vector.shape_cast %22 : vector<2xf32> to vector<2x1xf32>
    %cst_18 = arith.constant 3.200000e+01 : f32
    %24 = vector.broadcast %cst_18 : f32 to vector<2x1xf32>
    %25 = arith.divf %23, %24 : vector<2x1xf32>
    %cst_19 = arith.constant 9.99999974E-6 : f32
    %26 = vector.broadcast %cst_19 : f32 to vector<2x1xf32>
    %27 = arith.addf %25, %26 : vector<2x1xf32>
    %28 = math.rsqrt %27 : vector<2x1xf32>
    %29 = vector.broadcast %28 : vector<2x1xf32> to vector<2x32xf32>
    %30 = arith.mulf %20, %29 : vector<2x32xf32>
    %31 = vector.broadcast %5 : vector<1x32xf32> to vector<2x32xf32>
    %32 = arith.mulf %30, %31 : vector<2x32xf32>
    %33 = vector.broadcast %6 : vector<1x32xf32> to vector<2x32xf32>
    %34 = arith.addf %32, %33 : vector<2x32xf32>
    %c0_20 = arith.constant 0 : index
    %c0_21 = arith.constant 0 : index
    %35 = vector.load %arg1[%c0_20, %c0_21] : memref<8x1xi32, #tpu.memory_space<vmem>>, vector<8x1xi32>
    %36 = tpu.iota {dimensions = array<i32: 1>} : vector<8x2xi32>
    %37 = vector.broadcast %35 : vector<8x1xi32> to vector<8x2xi32>
    %38 = arith.cmpi eq, %37, %36 : vector<8x2xi32>
    %39 = arith.extui %38 : vector<8x2xi1> to vector<8x2xi32>
    %40 = arith.sitofp %39 : vector<8x2xi32> to vector<8x2xf32>
    %cst_22 = arith.constant dense<0.000000e+00> : vector<8x32xf32>
    %41 = tpu.matmul %40, %34, %cst_22 {dimension_numbers = #tpu.dot_dimension_numbers<[1], [0], [0], [1], [0, 0, 1, 1], [], []>} : vector<8x2xf32>, vector<2x32xf32>, vector<8x32xf32> -> vector<8x32xf32>
    %c0_23 = arith.constant 0 : index
    %c0_24 = arith.constant 0 : index
    %42 = vector.load %arg9[%c0_23, %c0_24] : memref<8x32xf32, #tpu.memory_space<vmem>>, vector<8x32xf32>
    tpu.vector_store %arg9[%c0_23, %c0_24], %41 {strides = array<i32>} : memref<8x32xf32, #tpu.memory_space<vmem>>, vector<8x32xf32>,
    return
  }
  func.func @transform_0(%arg0: i32) -> (i32, i32) {
    %c0_i32 = arith.constant 0 : i32
    %c0_i32_0 = arith.constant 0 : i32
    return %arg0, %c0_i32 : i32, i32
  }
  func.func @transform_1(%arg0: i32) -> (i32, i32) {
    %c0_i32 = arith.constant 0 : i32
    %c0_i32_0 = arith.constant 0 : i32
    %c0_i32_1 = arith.constant 0 : i32
    return %c0_i32, %c0_i32_0 : i32, i32
  }
  func.func @transform_2(%arg0: i32) -> (i32, i32) {
    %c0_i32 = arith.constant 0 : i32
    %c0_i32_0 = arith.constant 0 : i32
    %c0_i32_1 = arith.constant 0 : i32
    return %c0_i32, %c0_i32_0 : i32, i32
  }
  func.func @transform_3(%arg0: i32) -> (i32, i32) {
    %c0_i32 = arith.constant 0 : i32
    %c0_i32_0 = arith.constant 0 : i32
    %c0_i32_1 = arith.constant 0 : i32
    return %c0_i32, %c0_i32_0 : i32, i32
  }
  func.func @transform_4(%arg0: i32) -> (i32, i32) {
    %c0_i32 = arith.constant 0 : i32
    %c0_i32_0 = arith.constant 0 : i32
    %c0_i32_1 = arith.constant 0 : i32
    return %c0_i32, %c0_i32_0 : i32, i32
  }
  func.func @transform_5(%arg0: i32) -> (i32, i32) {
    %c0_i32 = arith.constant 0 : i32
    %c0_i32_0 = arith.constant 0 : i32
    %c0_i32_1 = arith.constant 0 : i32
    return %c0_i32, %c0_i32_0 : i32, i32
  }
  func.func @transform_6(%arg0: i32) -> (i32, i32) {
    %c0_i32 = arith.constant 0 : i32
    %c0_i32_0 = arith.constant 0 : i32
    %c0_i32_1 = arith.constant 0 : i32
    return %c0_i32, %c0_i32_0 : i32, i32
  }
  func.func @transform_7(%arg0: i32) -> (i32, i32) {
    %c0_i32 = arith.constant 0 : i32
    %c0_i32_0 = arith.constant 0 : i32
    %c0_i32_1 = arith.constant 0 : i32
    return %c0_i32, %c0_i32_0 : i32, i32
  }
  func.func @transform_8(%arg0: i32) -> (i32, i32) {
    %c0_i32 = arith.constant 0 : i32
    %c0_i32_0 = arith.constant 0 : i32
    return %arg0, %c0_i32 : i32, i32
  }
}

</mosaic_0001>

<bundles_post_ra>
// kernel: encoder_forward.3
= control target key start
LH: loop header
LB: loop body
LE: loop exit
PB: predicated region body
PF: predicated region fallthrough
CT: control target
= control target key end

     0   :  { %12 = vsyncpa [#allocation3], 0  ;;  %s505_s0 = inlined_call_operand.vmem [shape: f32[16,4], index: 0, kind: input, shape index: {}]   ;;  %s506_s1 = inlined_call_operand.hbm [shape: f32[4,32], index: 1, kind: input, shape index: {}]   ;;  %s507_s2 = inlined_call_operand.vmem [shape: f32[1,32], index: 2, kind: input, shape index: {}]   ;;  %s508_s3 = inlined_call_operand.vmem [shape: f32[32,32], index: 3, kind: input, shape index: {}]   ;;  %s509_s4 = inlined_call_operand.vmem [shape: f32[1,32], index: 4, kind: input, shape index: {}]   ;;  %s510_s5 = inlined_call_operand.hbm [shape: f32[1,32], index: 5, kind: input, shape index: {}]   ;;  %s511_s6 = inlined_call_operand.vmem [shape: f32[1,32], index: 6, kind: input, shape index: {}]   ;;  %s512_s7 = inlined_call_operand.hbm [shape: f32[16,32], index: 7, kind: output, shape index: {}]  }
   0x1   :  { %13 = vsyncpa [#allocation6], 0 }
   0x2   :  { %14 = vsyncpa [#allocation4], 0  ;;  %s416_s24 = smov [#allocation2]   ;;  %s417_s26 = smov [#allocation5]  }
   0x3   :  { %s23_s25 = sshll.u32 %s416_s24, 4  ;;  %s39_s27 = sshll.u32 %s417_s26, 4  ;;  %s24_s25 = int_to_ptr.vmem [resolvable:$true] %s23_s25  ;;  %s40_s27 = int_to_ptr.vmem [resolvable:$true] %s39_s27 }
   0x4   :  { %s358_s28 = scalar_lea.vmem %s24_s25, 64  ;;  %p363_p1 = scmp.lt.s32.totalorder %s24_s25, %s24_s25 }
   0x5   :  { %p359_p0 = scmp.ne.s32.totalorder %s24_s25, %s358_s28  ;;  %p364_p2 = scmp.lt.s32.totalorder %s358_s28, %s358_s28 }
   0x7   :  { %p365_p3 = por %p364_p2, %p363_p1 }
   0x9   :  { %p366_p4 = pnand %p365_p3, %p359_p0 }
   0xb   :  { %369 = shalt.err (!%p366_p4)
}
   0xc   :  { %26 = dma.hbm_to_vmem [thread:$0]  %s506_s1, 64, %s24_s25, [#allocation3]  }
   0xd   :  { %s378_s8 = scalar_lea.vmem %s40_s27, 16  ;;  %s382_s9 = scalar_lea.vmem %s40_s27, 32 }
   0xe   :  { %p379_p5 = scmp.ne.s32.totalorder %s40_s27, %s378_s8  ;;  %p383_p6 = scmp.lt.s32.totalorder %s40_s27, %s40_s27 }
   0xf   :  { %p384_p7 = scmp.lt.s32.totalorder %s382_s9, %s378_s8 }
  0x11   :  { %p385_p8 = por %p384_p7, %p383_p6 }
  0x13   :  { %p386_p9 = pnand %p385_p8, %p379_p5 }
  0x15   :  { %389 = shalt.err (!%p386_p9)
}
  0x16   :  { %42 = dma.hbm_to_vmem [thread:$0]  %s510_s5, 16, %s40_s27, [#allocation6]  }
  0x17   :  { %410 = dma.done.wait [#allocation3], 64  }
  0x18   :  { %411 = vsyncadd [#allocation3], 4294967232 }
  0x19   :  { %412 = dma.done.wait [#allocation6], 16  }
  0x1a   :  { %413 = vsyncadd [#allocation6], 4294967280  ;;  %vm75_vm0 = vcmask 1043456   ;;  %vm68_vm1 = vcmask 31744   ;;  %v53_v0 = vld [vmem:[#allocation2] sm:$0xf] }
  0x1b   :  { %v51_v1 = vld [vmem:[%s505_s0] sm:$0xff]  ;;  %v52_v2 = vld [vmem:[%s505_s0 + $0x8] sm:$0xff]  ;;  %325 = vmatprep.subr.msk.mxu0 %vm75_vm0, %v53_v0  ;;  %v58_v3 = vld [vmem:[%s508_s3 + $0x18] sm:$0xff]  ;;  %vm162_vm2 = vcmask 261120   ;;  %s418_s24 = smov [#allocation7]  }
  0x1c   :  { %327 = vmatprep.mubr.msk.f32.mxu0 %vm68_vm1, %v51_v1  ;;  %326 = vmatpush3.msk.msra.mxu0 %vm75_vm0, %v53_v0  ;;  %v57_v4 = vld [vmem:[%s508_s3 + $0x10] sm:$0xff]  ;;  %v56_v5 = vld [vmem:[%s508_s3 + $0x8] sm:$0xff]  ;;  %v55_v6 = vld [vmem:[%s508_s3] sm:$0xff]  ;;  %s294_s25 = sshll.u32 %s418_s24, 4  ;;  %s295_s25 = int_to_ptr.vmem [resolvable:$true] %s294_s25 }
  0x1d   :  { %328 = vmatmul.mubr.msk.f32.vlgmr.msra.gmra.mxu0 %vm68_vm1, %v52_v2  ;;  %330 = vmatprep.subr.mxu1 %v58_v3  ;;  %v307_v7 = vld [vmem:[%s507_s2] ss:$0 sm:$0xff]  ;;  %v314_v38 = vld [vmem:[#allocation5] ss:$0 sm:$0xff]  ;;  %s390_s26 = scalar_lea.vmem %s295_s25, 256  ;;  %p395_p11 = scmp.lt.s32.totalorder %s295_s25, %s295_s25 }
  0x1e   :  { %331 = vmatpush3.msra.mxu1 %v58_v3  ;;  %v311_v15 = vld [vmem:[%s509_s4] ss:$0 sm:$0xff]  ;;  %p391_p10 = scmp.ne.s32.totalorder %s295_s25, %s390_s26  ;;  %p396_p12 = scmp.lt.s32.totalorder %s390_s26, %s390_s26 }
  0x1f   :  { %332 = vmatprep.subr.mxu1 %v57_v4  ;;  %v315_v40 = vld [vmem:[%s511_s6] ss:$0 sm:$0xff] }
  0x20   :  { %333 = vmatpush3.msra.mxu1 %v57_v4  ;;  %p397_p13 = por %p396_p12, %p395_p11 }
  0x21   :  { %334 = vmatprep.subr.mxu1 %v56_v5 }
  0x22   :  { %335 = vmatpush3.msra.mxu1 %v56_v5  ;;  %p398_p0 = pnand %p397_p13, %p391_p10 }
  0x23   :  { %336 = vmatprep.subr.mxu1 %v55_v6 }
  0x24   :  { %337 = vmatpush3.msra.mxu1 %v55_v6 }
  0xdd   :  { %v329_v8 = vpop.f32.mrf.mxu0 }
  0xde   :  { %v151_v9 = vadd.f32 %v329_v8, %v307_v7 }
  0xdf   :  { %v145_v10 = vpop.f32.mrf.mxu0 }
  0xe0   :  { %v146_v11 = vadd.f32 %v307_v7, %v145_v10  ;;  %v155_v13 = vmax.f32 %v151_v9, 0.0 }
  0xe2   :  { %v154_v12 = vmax.f32 %v146_v11, 0.0 }
  0xe4   :  { %338 = vmatprep.mubr.msk.f32.mxu1 %vm162_vm2, %v154_v12 }
  0xe5   :  { %339 = vmatmul.mubr.msk.f32.vlgmr.msra.gmra.mxu1 %vm162_vm2, %v155_v13 }
 0x1a5   :  { %v340_v14 = vpop.f32.mrf.mxu1 }
 0x1a6   :  { %v241_v18 = vadd.f32 %v340_v14, %v311_v15 }
 0x1a7   :  { %v235_v16 = vpop.f32.mrf.mxu1 }
 0x1a8   :  { %v236_v17 = vadd.f32 %v311_v15, %v235_v16  ;;  %v247_v20 = vsel %vm162_vm2, %v241_v18, 0.0 }
 0x1aa   :  { %v244_v19 = vsel %vm162_vm2, %v236_v17, 0.0 }
 0x1ab   :  { %245 = vadd.xlane.f32.xlu0 %v244_v19 }
 0x1af   :  { %248 = vadd.xlane.f32.xlu0 %v247_v20 }
 0x234   :  { %v246_v21 = vpop.xlane.xlu0 %245 }
 0x235   :  { %v251_v22 = vmul.f32 0.03125, %v246_v21 }
 0x237   :  { %v253_v23 = vsub.f32 %v236_v17, %v251_v22 }
 0x238   :  { %v249_v24 = vpop.xlane.xlu0 %248 }
 0x239   :  { %v252_v25 = vmul.f32 0.03125, %v249_v24  ;;  %v255_v26 = vmul.f32 %v253_v23, %v253_v23 }
 0x23b   :  { %v254_v27 = vsub.f32 %v241_v18, %v252_v25  ;;  %v257_v28 = vsel %vm162_vm2, %v255_v26, 0.0 }
 0x23c   :  { %258 = vadd.xlane.f32.xlu1 %v257_v28 }
 0x23d   :  { %v256_v29 = vmul.f32 %v254_v27, %v254_v27 }
 0x23f   :  { %v260_v30 = vsel %vm162_vm2, %v256_v29, 0.0 }
 0x240   :  { %261 = vadd.xlane.f32.xlu1 %v260_v30 }
 0x2c5   :  { %v259_v31 = vpop.xlane.xlu1 %258 }
 0x2c6   :  { %v263_v32 = vmul.f32 0.03125, %v259_v31 }
 0x2c8   :  { %v265_v33 = vadd.f32 1e-05, %v263_v32 }
 0x2c9   :  { %v262_v34 = vpop.xlane.xlu1 %261 }
 0x2ca   :  { %346 = vrsqrt.f32 %v265_v33  ;;  %v264_v35 = vmul.f32 0.03125, %v262_v34 }
 0x2cc   :  { %v266_v36 = vadd.f32 1e-05, %v264_v35 }
 0x2ce   :  { %348 = vrsqrt.f32 %v266_v36 }
 0x2d7   :  { %v347_v37 = vpop.eup %346 }
 0x2d8   :  { %v269_v39 = vmul.f32 %v347_v37, %v253_v23 }
 0x2da   :  { %v277_v41 = vmul.f32 %v314_v38, %v269_v39 }
 0x2db   :  { %v349_v42 = vpop.eup %348 }
 0x2dc   :  { %v270_v43 = vmul.f32 %v349_v42, %v254_v27  ;;  %v285_v44 = vadd.f32 %v315_v40, %v277_v41 }
 0x2de   :  { %v278_v45 = vmul.f32 %v314_v38, %v270_v43  ;;  %287 = vst.msk [vmem:[#allocation7] sm:$0xff] %vm162_vm2, %v285_v44 }
 0x2e0   :  { %v286_v46 = vadd.f32 %v315_v40, %v278_v45 }
 0x2e2   :  { %288 = vst.msk [vmem:[#allocation7 + $0x8] sm:$0xff] %vm162_vm2, %v286_v46 }
 0x2e3   :  { %401 = shalt.err (!%p398_p0)
}
 0x2e4   :  { %s419_s6 = smov 128   ;;  %s420_s27 = smov 8  }
 0x2e5   :  { %300 = dma.vmem_to_hbm [thread:$0]  %s295_s25, 256, %s512_s7, [#allocation4], %s419_s6, %s419_s6, %s420_s27  }
 0x2e6   :  { %414 = dma.done.wait [#allocation4], 256  }
 0x2e7   :  { %415 = vsyncadd [#allocation4], 4294967040 }
 0x2e8   :  { %304 = vsyncpa [#allocation3], 1 }
 0x2e9   :  { %305 = vsyncpa [#allocation6], 1 }
 0x2ea   :  { %306 = vsyncpa [#allocation4], 1 }

// kernel: encoder_forward.2
= control target key start
LH: loop header
LB: loop body
LE: loop exit
PB: predicated region body
PF: predicated region fallthrough
CT: control target
= control target key end

     0   :  { %vm50_vm0 = vcmask 1043456   ;;  %vm46_vm1 = vcmask 31744   ;;  %v406_v1 = vmov 0.0   ;;  %vm407_vm2 = vmmov 0   ;;  %s493_s0 = inlined_call_operand.vmem [shape: s32[8,1], index: 0, kind: input, shape index: {}]   ;;  %s494_s1 = inlined_call_operand.vmem [shape: f32[2,4], index: 1, kind: input, shape index: {}]   ;;  %s495_s2 = inlined_call_operand.vmem [shape: f32[4,32], index: 2, kind: input, shape index: {}]   ;;  %s496_s3 = inlined_call_operand.vmem [shape: f32[1,32], index: 3, kind: input, shape index: {}]   ;;  %s497_s4 = inlined_call_operand.vmem [shape: f32[32,32], index: 4, kind: input, shape index: {}]   ;;  %s498_s5 = inlined_call_operand.vmem [shape: f32[1,32], index: 5, kind: input, shape index: {}]   ;;  %s499_s6 = inlined_call_operand.vmem [shape: f32[1,32], index: 6, kind: input, shape index: {}]   ;;  %s500_s7 = inlined_call_operand.vmem [shape: f32[1,32], index: 7, kind: input, shape index: {}]   ;;  %s501_s8 = inlined_call_operand.hbm [shape: f32[8,32], index: 8, kind: output, shape index: {}]  }
   0x1   :  { %v31_v0 = vld [vmem:[%s495_s2] sm:$0xf]  ;;  %355 = vmatprep.subr.mxu0 %v406_v1  ;;  %357 = vmatprep.mubr.msk.f32.mxu0 %vm407_vm2, %v406_v1  ;;  %v36_v3 = vld [vmem:[%s497_s4 + $0x18] sm:$0xff] }
   0x2   :  { %v30_v2 = vld [vmem:[%s494_s1] sm:$0x3]  ;;  %356 = vmatpush3.msk.msra.mxu0 %vm50_vm0, %v31_v0  ;;  %360 = vmatprep.subr.mxu1 %v406_v1 }
   0x3   :  { %13 = vsyncpa [#allocation3], 0  ;;  %358 = vmatmul.mubr.msk.f32.vlgmr.msra.gmra.mxu0 %vm46_vm1, %v30_v2  ;;  %361 = vmatpush3.msra.mxu1 %v36_v3  ;;  %v35_v4 = vld [vmem:[%s497_s4 + $0x10] sm:$0xff]  ;;  %v34_v5 = vld [vmem:[%s497_s4 + $0x8] sm:$0xff]  ;;  %vm131_vm3 = vcmask 261120   ;;  %vm205_vm4 = vcmask 254976   ;;  %v235_v27 = vlaneseq }
   0x4   :  { %362 = vmatprep.subr.mxu1 %v406_v1  ;;  %368 = vmatprep.mubr.msk.f32.mxu1 %vm407_vm2, %v406_v1  ;;  %v33_v6 = vld [vmem:[%s497_s4] sm:$0xff]  ;;  %v408_v18 = vmov 0   ;;  %vm247_vm6 = vcmask 1041408   ;;  %vm243_vm7 = vcmask 15360   ;;  %s409_s21 = smov [#allocation2]  }
   0x5   :  { %371 = vmatprep.subr.mxu0 %v406_v1  ;;  %373 = vmatprep.mubr.msk.f32.mxu0 %vm407_vm2, %v406_v1  ;;  %v336_v7 = vld [vmem:[%s496_s3] ss:$0 sm:$0xff]  ;;  %v236_v28 = vand.u32 127, %v235_v27  ;;  %s328_s22 = sshll.u32 %s409_s21, 4  ;;  %s329_s22 = int_to_ptr.vmem [resolvable:$true] %s328_s22 }
   0x6   :  { %363 = vmatpush3.msra.mxu1 %v35_v4  ;;  %v339_v12 = vld [vmem:[%s498_s5] ss:$0 sm:$0xff]  ;;  %380 = vset.pattern.permute.xlu1 %v408_v18  ;;  %p389_p1 = scmp.lt.s32.totalorder %s329_s22, %s329_s22 }
   0x7   :  { %364 = vmatprep.subr.mxu1 %v406_v1  ;;  %v234_v17 = vld [vmem:[%s493_s0] sm:$0xff]  ;;  %381 = vset.pattern.permute.xlu0 %v408_v18 }
   0x8   :  { %365 = vmatpush3.msra.mxu1 %v34_v5  ;;  %238 = vperm.xlu1 %380, %v234_v17   ;;  %v341_v31 = vld [vmem:[%s499_s6] ss:$0 sm:$0xff]  ;;  %s384_s6 = scalar_lea.vmem %s329_s22, 128 }
   0x9   :  { %366 = vmatprep.subr.mxu1 %v406_v1  ;;  %v342_v33 = vld [vmem:[%s500_s7] ss:$0 sm:$0xff]  ;;  %p385_p0 = scmp.ne.s32.totalorder %s329_s22, %s384_s6  ;;  %p390_p2 = scmp.lt.s32.totalorder %s384_s6, %s384_s6 }
   0xa   :  { %367 = vmatpush3.msra.mxu1 %v33_v6 }
   0xb   :  { %p391_p3 = por %p390_p2, %p389_p1 }
   0xd   :  { %p392_p4 = pnand %p391_p3, %p385_p0 }
  0x83   :  { %v239_v29 = vpop.permute.xlu1 %238 }
  0x84   :  { %vm240_vm5 = vcmp.eq.s32.totalorder %v239_v29, %v236_v28 }
  0x85   :  { %v343_v35 = vsel %vm240_vm5, 1.0, %v406_v1 }
  0xc3   :  { %v120_v8 = vpop.f32.mrf.mxu0 }
  0xc4   :  { %v121_v9 = vadd.f32 %v336_v7, %v120_v8 }
  0xc5   :  { %v359_v10 = vpop.f32.mrf.mxu0 }
  0xc6   :  { %v124_v11 = vmax.f32 %v121_v9, 0.0 }
  0xc8   :  { %369 = vmatmul.mubr.msk.f32.vlgmr.msra.gmra.mxu1 %vm131_vm3, %v124_v11 }
 0x188   :  { %v201_v13 = vpop.f32.mrf.mxu1 }
 0x189   :  { %v202_v14 = vadd.f32 %v339_v12, %v201_v13 }
 0x18a   :  { %v370_v15 = vpop.f32.mrf.mxu1 }
 0x18b   :  { %v206_v16 = vsel %vm205_vm4, %v202_v14, 0.0 }
 0x18c   :  { %207 = vadd.xlane.f32.xlu0 %v206_v16 }
 0x215   :  { %v208_v19 = vpop.xlane.xlu0 %207 }
 0x216   :  { %v210_v20 = vmul.f32 0.03125, %v208_v19 }
 0x218   :  { %v211_v21 = vsub.f32 %v202_v14, %v210_v20 }
 0x21a   :  { %v212_v22 = vmul.f32 %v211_v21, %v211_v21 }
 0x21c   :  { %v213_v23 = vsel %vm205_vm4, %v212_v22, 0.0 }
 0x21d   :  { %214 = vadd.xlane.f32.xlu0 %v213_v23 }
 0x2a6   :  { %v215_v24 = vpop.xlane.xlu0 %214 }
 0x2a7   :  { %v216_v25 = vmul.f32 0.03125, %v215_v24 }
 0x2a9   :  { %v217_v26 = vadd.f32 1e-05, %v216_v25 }
 0x2ab   :  { %382 = vrsqrt.f32 %v217_v26 }
 0x2b8   :  { %v383_v30 = vpop.eup %382 }
 0x2b9   :  { %v219_v32 = vmul.f32 %v383_v30, %v211_v21 }
 0x2bb   :  { %v226_v34 = vmul.f32 %v341_v31, %v219_v32 }
 0x2bd   :  { %v233_v36 = vadd.f32 %v342_v33, %v226_v34 }
 0x2bf   :  { %372 = vmatpush3.msk.msra.mxu0 %vm247_vm6, %v233_v36 }
 0x2c0   :  { %374 = vmatmul.mubr.msk.f32.vlgmr.msra.gmra.mxu0 %vm243_vm7, %v343_v35 }
 0x380   :  { %v317_v37 = vpop.f32.mrf.mxu0 }
 0x381   :  { %321 = vst.msk [vmem:[#allocation2] sm:$0xff] %vm131_vm3, %v317_v37 }
 0x382   :  { %v375_v38 = vpop.f32.mrf.mxu0 }
 0x383   :  { %395 = shalt.err (!%p392_p4)
}
 0x384   :  { %331 = dma.vmem_to_hbm [thread:$0]  %s329_s22, 128, %s501_s8, [#allocation3]  }
 0x385   :  { %404 = dma.done.wait [#allocation3], 128  }
 0x386   :  { %405 = vsyncadd [#allocation3], 4294967168 }
 0x387   :  { %335 = vsyncpa [#allocation3], 1 }

</bundles_post_ra>
